<compile_context>
chip_gen: v6e
topology: v6e:2x2x1
jax: 0.10.0
libtpu: 0.0.40
codegen_flags: <defaults>
</compile_context>

<pallas_src>
import jax
import jax.numpy as jnp
from jax.experimental import pallas as pl
from jax.experimental.pallas import tpu as pltpu

LANE = 128            # TPU vreg lane width
MAX_TR = 2048         # max rows-of-128 per block: 2 MiB x + 1 MiB y per buffer
SMALL_N_BYPASS = 2048  # below this, skip pallas_call entirely


def _round_up(x, m):
    return ((x + m - 1) // m) * m


def _mlr_kernel(x_ref, w_ref, b_ref, o_ref):
    # x_ref: (TR, 256) VMEM   w_ref: (256, 128) VMEM (block-diagonal weights)
    # b_ref: (1,) SMEM        o_ref: (TR, 128) VMEM
    y = jnp.dot(
        x_ref[...].astype(jnp.float32),
        w_ref[...],
        preferred_element_type=jnp.float32,
    ) + b_ref[0]
    o_ref[...] = y.astype(o_ref.dtype)


def mlr_forward(x, weight, bias, *, force_kernel=False):
    """Pallas equivalent of nn.Linear(2, 1): y = x @ W.T + b, x:(N,2) -> y:(N,1)."""
    n, f = x.shape
    assert f == 2, "MLR expects in_features == 2"
    dtype = x.dtype

    w_row = weight.reshape(1, 2)
    b_vec = bias.reshape(1)

    # Small-N bypass: launch overhead dwarfs 4N FLOPs / 12N bytes here.
    if n < SMALL_N_BYPASS and not force_kernel:
        return (x @ w_row.T + b_vec).reshape(n, 1)

    padded_n = _round_up(n, LANE)
    rows = padded_n // LANE

    # Keep x contiguous: free metadata reshape of the row-major buffer.
    x_flat = x.reshape(-1)                              # (2N,), free
    if padded_n != n:                                   # only when unaligned
        x_flat = jnp.pad(x_flat, (0, 2 * (padded_n - n)))
    x2d = x_flat.reshape(rows, 2 * LANE)                # (rows, 256), free

    # Constant block-diagonal weight: W_bd[2k, k] = w0, W_bd[2k+1, k] = w1.
    w_flat = weight.reshape(2).astype(jnp.float32)
    eye = jnp.eye(LANE, dtype=jnp.float32)
    w_bd = jnp.stack([w_flat[0] * eye, w_flat[1] * eye], axis=1).reshape(
        2 * LANE, LANE)
    b_f32 = bias.reshape(1).astype(jnp.float32)

    # Tile: multiple of 8 sublanes, capped for v5e VMEM, >=4 blocks when
    # possible so v7x's two TensorCores both get work.
    if rows <= 8:
        tr = rows                       # full extent (single block)
    else:
        tr = min(MAX_TR, max(8, _round_up(pl.cdiv(rows, 4), 8)))
    grid = (pl.cdiv(rows, tr),)         # partial last block is fine (masked)

    itemsize = jnp.dtype(dtype).itemsize
    cost = pl.CostEstimate(
        flops=2 * padded_n * 2 * LANE,                       # MXU work actually issued
        transcendentals=0,
        bytes_accessed=(2 * padded_n + padded_n) * itemsize  # x read + y write
        + 2 * LANE * LANE * 4,                               # resident weights
    )

    out = pl.pallas_call(
        _mlr_kernel,
        out_shape=jax.ShapeDtypeStruct((rows, LANE), dtype),
        grid=grid,
        in_specs=[
            pl.BlockSpec((tr, 2 * LANE), lambda i: (i, 0)),          # x tile
            pl.BlockSpec((2 * LANE, LANE), lambda i: (0, 0)),        # weights (resident)
            pl.BlockSpec(memory_space=pltpu.MemorySpace.SMEM),       # bias scalar
        ],
        out_specs=pl.BlockSpec((tr, LANE), lambda i: (i, 0)),
        compiler_params=pltpu.CompilerParams(
            dimension_semantics=("parallel",),
        ),
        cost_estimate=cost,
    )(x2d, w_bd, b_f32)

    # Back to the PyTorch convention; metadata-only unless N isn't 128-aligned.
    y_flat = out.reshape(-1)
    if padded_n != n:
        y_flat = y_flat[:n]
    return y_flat.reshape(n, 1)


if __name__ == "__main__":
    key = jax.random.PRNGKey(0)
    kx, kw, kb, kx2, kx3 = jax.random.split(key, 5)

    # Deterministic parameters (mimic nn.Linear default U(-1/sqrt(fan_in), +)).
    bound = 1.0 / jnp.sqrt(2.0)
    weight = jax.random.uniform(kw, (1, 2), minval=-bound, maxval=bound,
                                dtype=jnp.float32)
    bias = jax.random.uniform(kb, (1,), minval=-bound, maxval=bound,
                              dtype=jnp.float32)

    # 1) Tiny batch, consistent with the module's typical use (bypass path).
    x_small = jax.random.normal(kx, (8, 2), dtype=jnp.float32)
    y_small = mlr_forward(x_small, weight, bias)
    jax.block_until_ready(y_small)
    ref_small = x_small @ weight.T + bias
    assert y_small.shape == (8, 1)
    assert jnp.allclose(y_small, ref_small, atol=1e-5, rtol=1e-5)

    # 2) Pallas kernel path: 128-aligned N (no pad copy), multi-block grid.
    x_a = jax.random.normal(kx2, (4096, 2), dtype=jnp.float32)
    y_a = mlr_forward(x_a, weight, bias, force_kernel=True)
    jax.block_until_ready(y_a)
    ref_a = x_a @ weight.T + bias
    assert y_a.shape == (4096, 1)
    assert jnp.allclose(y_a, ref_a, atol=1e-4, rtol=1e-4)

    # 3) Pallas kernel path: ragged N (exercises 128-pad + tail slice).
    x_b = jax.random.normal(kx3, (1000, 2), dtype=jnp.float32)
    y_b = mlr_forward(x_b, weight, bias, force_kernel=True)
    jax.block_until_ready(y_b)
    ref_b = x_b @ weight.T + bias
    assert y_b.shape == (1000, 1)
    assert jnp.allclose(y_b, ref_b, atol=1e-4, rtol=1e-4)

    print("KERNEL_OK")
</pallas_src>

<mosaic_0001>
module attributes {stable_mosaic.version = 11 : i64} {
  func.func @_mlr_kernel(%arg0: i32, %arg1: memref<8x256xf32, #tpu.memory_space<vmem>>, %arg2: memref<256x128xf32, #tpu.memory_space<vmem>>, %arg3: memref<1xf32, #tpu.memory_space<smem>>, %arg4: memref<8x128xf32, #tpu.memory_space<vmem>>) attributes {dimension_semantics = [#tpu.dimension_semantics<parallel>], iteration_bounds = array<i64: 4>, scalar_prefetch = 0 : i64, scratch_operands = 0 : i64, tpu.core_type = #tpu.core_type<tc>, window_params = [{transform_indices = @transform_0, window_bounds = array<i64: 8, 256>}, {pipeline_mode = #tpu.pipeline_mode<synchronous>, transform_indices = @transform_1, window_bounds = array<i64: 256, 128>}, {transform_indices = @transform_2, window_bounds = array<i64: 1>}, {transform_indices = @transform_3, window_bounds = array<i64: 8, 128>}]} {
    %c0 = arith.constant 0 : index
    %c0_0 = arith.constant 0 : index
    %0 = vector.load %arg1[%c0, %c0_0] : memref<8x256xf32, #tpu.memory_space<vmem>>, vector<8x256xf32>
    %c0_1 = arith.constant 0 : index
    %c0_2 = arith.constant 0 : index
    %1 = vector.load %arg2[%c0_1, %c0_2] : memref<256x128xf32, #tpu.memory_space<vmem>>, vector<256x128xf32>
    %cst = arith.constant dense<0.000000e+00> : vector<8x128xf32>
    %2 = tpu.matmul %0, %1, %cst {dimension_numbers = #tpu.dot_dimension_numbers<[1], [0], [0], [1], [0, 0, 1, 1], [], []>} : vector<8x256xf32>, vector<256x128xf32>, vector<8x128xf32> -> vector<8x128xf32>
    %c0_3 = arith.constant 0 : index
    %3 = memref.load %arg3[%c0_3] : memref<1xf32, #tpu.memory_space<smem>>
    %4 = vector.broadcast %3 : f32 to vector<8x128xf32>
    %5 = arith.addf %2, %4 : vector<8x128xf32>
    %c0_4 = arith.constant 0 : index
    %c0_5 = arith.constant 0 : index
    %6 = vector.load %arg4[%c0_4, %c0_5] : memref<8x128xf32, #tpu.memory_space<vmem>>, vector<8x128xf32>
    tpu.vector_store %arg4[%c0_4, %c0_5], %5 {strides = array<i32>} : memref<8x128xf32, #tpu.memory_space<vmem>>, vector<8x128xf32>,
    return
  }
  func.func @transform_0(%arg0: i32) -> (i32, i32) {
    %c0_i32 = arith.constant 0 : i32
    %c0_i32_0 = arith.constant 0 : i32
    return %arg0, %c0_i32 : i32, i32
  }
  func.func @transform_1(%arg0: i32) -> (i32, i32) {
    %c0_i32 = arith.constant 0 : i32
    %c0_i32_0 = arith.constant 0 : i32
    %c0_i32_1 = arith.constant 0 : i32
    return %c0_i32, %c0_i32_0 : i32, i32
  }
  func.func @transform_2(%arg0: i32) -> i32 {
    %c0_i32 = arith.constant 0 : i32
    %c0_i32_0 = arith.constant 0 : i32
    return %c0_i32 : i32
  }
  func.func @transform_3(%arg0: i32) -> (i32, i32) {
    %c0_i32 = arith.constant 0 : i32
    %c0_i32_0 = arith.constant 0 : i32
    return %arg0, %c0_i32 : i32, i32
  }
}

</mosaic_0001>

<bundles_post_ra>
// kernel: tpu_custom_call.1
= control target key start
LH: loop header
LB: loop body
LE: loop exit
PB: predicated region body
PF: predicated region fallthrough
CT: control target
= control target key end

     0   :  { %s823_s0 = inlined_call_operand.hbm [shape: f32[32,256], index: 0, kind: input, shape index: {}]   ;;  %s824_s1 = inlined_call_operand.hbm [shape: f32[256,128], index: 1, kind: input, shape index: {}]   ;;  %s825_s2 = inlined_call_operand.<no memory space> [shape: f32[1], index: 2, kind: input, shape index: {}]   ;;  %s826_s3 = inlined_call_operand.hbm [shape: f32[32,128], index: 3, kind: output, shape index: {}]  }
   0x1   :  { %8 = sst [smem:[#allocation2]] %s825_s2 }
   0x2   :  { %9 = vsyncpa [#allocation4], 0 }
   0x3   :  { %11 = vsyncpa [#allocation4 + $0x1], 0 }
   0x4   :  { %12 = vsyncpa [#allocation7], 0 }
   0x5   :  { %13 = vsyncpa [#allocation5], 0 }
   0x6   :  { %15 = vsyncpa [#allocation5 + $0x1], 0  ;;  %s666_s14 = smov 0   ;;  %s668_s15 = smov 0  }
   0x7   :  { %s670_s16 = smov 0   ;;  %s672_s17 = smov 0  }
   0x8 LB: > { %s687_s2 = sadd.s32 4294967295, %s636_s17   ;;  %s404_s18 = sadd.s32 4294967294, %s636_s17   ;;  %s636_s17 = sphi %s672_s17, %s847_s17   ;;  %s632_s16 = sphi %s670_s16, %s846_s16   ;;  %s628_s15 = sphi %s668_s15, %s845_s15   ;;  %s624_s14 = sphi %s666_s14, %s844_s14  }
   0x9   : > { %p41_p0 = scmp.ne.s32.totalorder %s628_s15, %s624_s14  ;;  %p827_p1 = scmp.eq.s32.totalorder %s687_s2, 0 }
   0xa   : > { %p113_p3 = scmp.eq.s32.totalorder %s404_s18, 3  ;;  %p405_p5 = scmp.ge.s32.totalorder %s636_s17, 1 }
   0xb   : > { %p696_p4 = por %p827_p1, %p41_p0  ;;  %p120_p7 = scmp.lt.s32.totalorder %s636_s17, 5 }
   0xc   : > { %p701_p6 = por %p113_p3, %p41_p0  ;;  %s638_s22 = smov [#allocation6]  }
   0xd   : > { %s831_s19 = scalar_select %p696_p4, 1, 0 }
   0xe   : > { %s832_s20 = scalar_select %p701_p6, 1, 0 }
   0xf   : > { %p706_p8 = pnand %p405_p5, %p120_p7  ;;  %s132_s23 = sshll.u32 %s638_s22, 4  ;;  %s133_s23 = int_to_ptr.vmem [resolvable:$true] %s132_s23 }
  0x10   : > { %s719_s25 = sadd.s32 1, %s636_s17   ;;  %s28_s26 = sadd.s32 1, %s632_s16 }
  0x11   : > { %s833_s21 = scalar_select %p706_p8, 1, 0 }
  0x12   : > { %p463_p9 = pneg %p706_p8  ;;  %s25_s27 = ssub.s32 %s636_s17, %s719_s25 }
  0x13   : > { %s525_s28 = scalar_lea.vmem %s133_s23, 4096  ;;  %p533_p3 = scmp.lt.s32.totalorder %s133_s23, %s133_s23 }
  0x14   : > { %p714_p10 = pnand %p463_p9, %p827_p1  ;;  %p526_p12 = scmp.ne.s32.totalorder %s133_s23, %s525_s28 }
  0x15   : > { %p534_p5 = scmp.lt.s32.totalorder %s525_s28, %s525_s28 }
  0x16   : > { %p516_p11 = pneg %p714_p10 }
  0x17   : > { %p535_p7 = por %p534_p5, %p533_p3 }
  0x18   : > { %p528_p13 = pnand %p526_p12, %p516_p11 }
  0x1a   : > { %p529_p0 = pneg %p528_p13 }
  0x1c   : > { %p536_p2 = pnand %p535_p7, %p529_p0 }
  0x1e   : > { %539 = shalt.err (!%p536_p2)
}
  0x1f   : > { %s639_s29 = smov 128   ;;  %s640_s30 = smov 8  }
  0x20   : > { %466 = dma.hbm_to_vmem [thread:$0]  (!%p714_p10), %s824_s1, 4096, %s133_s23, [#allocation7], %s639_s29, %s639_s29, %s640_s30  }
  0x21   : > { %p26_p9 = scmp.eq.s32.totalorder %s25_s27, 0  ;;  %p35_p11 = scmp.ne.s32.totalorder %s632_s16, %s628_s15 }
  0x22   : > { %p36_p12 = scmp.eq.s32.totalorder %s636_s17, 0  ;;  %p476_p2 = scmp.lt.s32.totalorder %s636_s17, 4 }
  0x23   : > { %s736_s6 = scalar_select %p26_p9, %s632_s16, %s28_s26  }
  0x24   : > { %p37_p13 = por %p36_p12, %p35_p11  ;;  %p835_p0 = scmp.eq.s32.totalorder %s687_s2, 3 }
  0x25   : > { %s149_s8 = sand.u32 1, %s632_s16   ;;  %s419_s9 = sshll.u32 %s636_s17, 8 }
  0x26   : > { %p740_p3 = por %p835_p0, %p35_p11  ;;  %s408_s10 = sshll.u32 %s149_s8, 4 }
  0x27   : > { %s749_s13 = scalar_lea.hbm %s823_s0, %s419_s9  ;;  %s153_s18 = scalar_lea.vmem [#allocation3], %s408_s10 }
  0x28   : > { %s836_s7 = scalar_select %p740_p3, 1, 0 }
  0x29   : > { %s161_s22 = sshll.u32 %s153_s18, 4  ;;  %p751_p10 = pnand %p476_p2, %p37_p13  ;;  %s162_s22 = int_to_ptr.vmem [resolvable:$true] %s161_s22 }
  0x2a   : > { %s150_s24 = scalar_lea.sflag [#allocation4], %s149_s8  ;;  %s540_s26 = scalar_lea.hbm %s749_s13, 256 }
  0x2b   : > { %p541_p5 = scmp.ne.s32.totalorder %s749_s13, %s540_s26  ;;  %p542_p7 = pneg %p751_p10 }
  0x2c   : > { %s545_s29 = scalar_lea.hbm %s823_s0, 1024  ;;  %p546_p12 = scmp.lt.s32.totalorder %s749_s13, %s823_s0 }
  0x2d   : > { %p543_p9 = pnand %p542_p7, %p541_p5  ;;  %p547_p2 = scmp.lt.s32.totalorder %s545_s29, %s540_s26 }
  0x2f   : > { %p544_p11 = pneg %p543_p9  ;;  %p548_p13 = por %p547_p2, %p546_p12 }
  0x31   : > { %p549_p0 = pnand %p548_p13, %p544_p11 }
  0x33   : > { %552 = shalt.err (!%p549_p0)
}
  0x34   : > { %s553_s5 = scalar_lea.vmem %s162_s22, 256  ;;  %s641_s8 = smov [#allocation3]  }
  0x35   : > { %p554_p1 = scmp.ne.s32.totalorder %s162_s22, %s553_s5  ;;  %s558_s9 = sshll.u32 %s641_s8, 4  ;;  %s559_s9 = int_to_ptr.vmem [resolvable:$false] %s558_s9 }
  0x36   : > { %s560_s10 = scalar_lea.vmem %s559_s9, 512  ;;  %p561_p5 = scmp.lt.s32.totalorder %s162_s22, %s559_s9 }
  0x37   : > { %p556_p6 = pnand %p554_p1, %p542_p7  ;;  %p562_p9 = scmp.lt.s32.totalorder %s560_s10, %s553_s5 }
  0x39   : > { %p557_p3 = pneg %p556_p6  ;;  %p563_p4 = por %p562_p9, %p561_p5 }
  0x3b   : > { %p564_p8 = pnand %p563_p4, %p557_p3 }
  0x3d   : > { %567 = shalt.err (!%p564_p8)
}
  0x3e   : > { %470 = dma.hbm_to_vmem [thread:$0]  (!%p751_p10), %s749_s13, 256, %s162_s22, %s150_s24  }
  0x3f   : > { %p838_p11 = scmp.ne.s32.totalorder %s833_s21, 0 }
  0x40   : > { %s772_s11 = sand.u32 (!%p838_p11), 1, %s628_s15   ;;  %p839_p1 = scmp.ne.s32.totalorder (!%p838_p11), %s831_s19, 0 }
  0x41   : > { %170 = sbr.rel (%p838_p11) target bundleno = 319 (0x13f), region = 32  ;;  %s412_s12 = sshll.u32 (!%p838_p11), %s772_s11, 4 }
  0x42   : > { %s173_s18 = scalar_lea.sflag (!%p838_p11), [#allocation4], %s772_s11  ;;  %s776_s26 = scalar_lea.vmem (!%p838_p11), [#allocation3], %s412_s12 }
  0x46   : > { %611 = dma.done.wait (%p839_p1), %s173_s18, 256  }
  0x47   : > { %613 = vsyncadd (%p839_p1), %s173_s18, 4294967040  ;;  %p840_p4 = scmp.eq.s32.totalorder %s687_s2, 0 }
  0x49   : > { %615 = dma.done.wait (%p840_p4), [#allocation7], 4096   ;;  %p841_p6 = pmov %p840_p4 }
  0x4a   : > { %v236_v0 = vld [vmem:[#allocation6 + $0xf8] sm:$0xff]  ;;  %v235_v2 = vld [vmem:[#allocation6 + $0xf0] sm:$0xff]  ;;  %v234_v4 = vld [vmem:[#allocation6 + $0xe8] sm:$0xff]  ;;  %s237_s19 = sld [smem:[#allocation2]]  ;;  %s414_s21 = sshll.u32 %s772_s11, 3 }
  0x4b   : > { %617 = vsyncadd (%p841_p6), [#allocation7], 4294963200  ;;  %v220_v1 = vld [vmem:[#allocation6 + $0x78] sm:$0xff]  ;;  %420 = vmatprep.subr.mxu0 %v236_v0  ;;  %v219_v3 = vld [vmem:[#allocation6 + $0x70] sm:$0xff]  ;;  %s416_s13 = sshll.u32 %s687_s2, 7  ;;  %s202_s22 = scalar_lea.vmem [#allocation8], %s414_s21 }
  0x4c   : > { %421 = vmatpush3.msra.mxu0 %v220_v1  ;;  %v218_v5 = vld [vmem:[#allocation6 + $0x68] sm:$0xff]  ;;  %v233_v6 = vld [vmem:[#allocation6 + $0xe0] sm:$0xff]  ;;  %v232_v8 = vld [vmem:[#allocation6 + $0xd8] sm:$0xff]  ;;  %s324_s23 = sshll.u32 %s202_s22, 4  ;;  %s322_s28 = scalar_lea.hbm %s826_s3, %s416_s13  ;;  %s325_s23 = int_to_ptr.vmem [resolvable:$true] %s324_s23 }
  0x4d   : > { %422 = vmatprep.subr.mxu0 %v235_v2  ;;  %v217_v7 = vld [vmem:[#allocation6 + $0x60] sm:$0xff]  ;;  %v216_v9 = vld [vmem:[#allocation6 + $0x58] sm:$0xff]  ;;  %v231_v10 = vld [vmem:[#allocation6 + $0xd0] sm:$0xff]  ;;  %s311_s29 = scalar_lea.sflag [#allocation5], %s772_s11  ;;  %s568_s30 = scalar_lea.vmem %s325_s23, 128 }
  0x4e   : > { %423 = vmatpush3.msra.mxu0 %v219_v3  ;;  %v215_v11 = vld [vmem:[#allocation6 + $0x50] sm:$0xff]  ;;  %v230_v12 = vld [vmem:[#allocation6 + $0xc8] sm:$0xff]  ;;  %v229_v15 = vld [vmem:[#allocation6 + $0xc0] sm:$0xff]  ;;  %p569_p8 = scmp.ne.s32.totalorder %s325_s23, %s568_s30  ;;  %p842_p3 = scmp.ne.s32.totalorder %s836_s7, 0 }
  0x4f   : > { %424 = vmatprep.subr.mxu0 %v234_v4  ;;  %v204_v13 = vld [vmem:[%s776_s26 + $0x8] sm:$0xff]  ;;  %v213_v16 = vld [vmem:[#allocation6 + $0x40] sm:$0xff]  ;;  %v227_v19 = vld [vmem:[#allocation6 + $0xb0] sm:$0xff]  ;;  %s642_s4 = smov [#allocation8]  }
  0x50   : > { %425 = vmatpush3.msra.mxu0 %v218_v5  ;;  %v214_v14 = vld [vmem:[#allocation6 + $0x48] sm:$0xff]  ;;  %303 = vmatprep.mubr.f32.mxu0 %v204_v13  ;;  %v228_v17 = vld [vmem:[#allocation6 + $0xb8] sm:$0xff]  ;;  %v211_v20 = vld [vmem:[#allocation6 + $0x30] sm:$0xff]  ;;  %v238_v35 = vstv %s237_s19  ;;  %p570_p10 = pnand %p569_p8, %p842_p3  ;;  %s572_s5 = sshll.u32 %s642_s4, 4  ;;  %s573_s5 = int_to_ptr.vmem [resolvable:$false] %s572_s5 }
  0x51   : > { %426 = vmatprep.subr.mxu0 %v233_v6  ;;  %v212_v18 = vld [vmem:[#allocation6 + $0x38] sm:$0xff]  ;;  %v226_v21 = vld [vmem:[#allocation6 + $0xa8] sm:$0xff]  ;;  %v225_v23 = vld [vmem:[#allocation6 + $0xa0] sm:$0xff]  ;;  %s574_s2 = scalar_lea.vmem %s573_s5, 256  ;;  %p575_p12 = scmp.lt.s32.totalorder %s325_s23, %s573_s5 }
  0x52   : > { %427 = vmatpush3.msra.mxu0 %v217_v7  ;;  %v210_v22 = vld [vmem:[#allocation6 + $0x28] sm:$0xff]  ;;  %v209_v24 = vld [vmem:[#allocation6 + $0x20] sm:$0xff]  ;;  %v224_v25 = vld [vmem:[#allocation6 + $0x98] sm:$0xff]  ;;  %p571_p7 = pneg %p570_p10  ;;  %p576_p2 = scmp.lt.s32.totalorder %s574_s2, %s568_s30 }
  0x53   : > { %428 = vmatprep.subr.mxu0 %v232_v8  ;;  %v208_v26 = vld [vmem:[#allocation6 + $0x18] sm:$0xff]  ;;  %v223_v27 = vld [vmem:[#allocation6 + $0x90] sm:$0xff]  ;;  %v222_v29 = vld [vmem:[#allocation6 + $0x88] sm:$0xff] }
  0x54   : > { %429 = vmatpush3.msra.mxu0 %v216_v9  ;;  %v207_v28 = vld [vmem:[#allocation6 + $0x10] sm:$0xff]  ;;  %v206_v30 = vld [vmem:[#allocation6 + $0x8] sm:$0xff]  ;;  %v221_v31 = vld [vmem:[#allocation6 + $0x80] sm:$0xff]  ;;  %p577_p13 = por %p576_p2, %p575_p12 }
  0x55   : > { %430 = vmatprep.subr.mxu0 %v231_v10  ;;  %v205_v32 = vld [vmem:[#allocation6] sm:$0xff] }
  0x56   : > { %431 = vmatpush3.msra.mxu0 %v215_v11  ;;  %v203_v33 = vld [vmem:[%s776_s26] sm:$0xff]  ;;  %p578_p0 = pnand %p577_p13, %p571_p7 }
  0x57   : > { %432 = vmatprep.subr.mxu0 %v230_v12 }
  0x58   : > { %433 = vmatpush3.msra.mxu0 %v214_v14 }
  0x59   : > { %434 = vmatprep.subr.mxu0 %v229_v15 }
  0x5a   : > { %435 = vmatpush3.msra.mxu0 %v213_v16 }
  0x5b   : > { %436 = vmatprep.subr.mxu0 %v228_v17 }
  0x5c   : > { %437 = vmatpush3.msra.mxu0 %v212_v18 }
  0x5d   : > { %438 = vmatprep.subr.mxu0 %v227_v19 }
  0x5e   : > { %439 = vmatpush3.msra.mxu0 %v211_v20 }
  0x5f   : > { %440 = vmatprep.subr.mxu0 %v226_v21 }
  0x60   : > { %441 = vmatpush3.msra.mxu0 %v210_v22 }
  0x61   : > { %442 = vmatprep.subr.mxu0 %v225_v23 }
  0x62   : > { %443 = vmatpush3.msra.mxu0 %v209_v24 }
  0x63   : > { %444 = vmatprep.subr.mxu0 %v224_v25 }
  0x64   : > { %445 = vmatpush3.msra.mxu0 %v208_v26 }
  0x65   : > { %446 = vmatprep.subr.mxu0 %v223_v27 }
  0x66   : > { %447 = vmatpush3.msra.mxu0 %v207_v28 }
  0x67   : > { %448 = vmatprep.subr.mxu0 %v222_v29 }
  0x68   : > { %449 = vmatpush3.msra.mxu0 %v206_v30 }
  0x69   : > { %450 = vmatprep.subr.mxu0 %v221_v31 }
  0x6a   : > { %451 = vmatpush3.msra.mxu0 %v205_v32 }
  0x6b   : > { %304 = vmatmul.mubr.f32.vlgmr.msra.gmra.mxu0 %v203_v33 }
 0x12b   : > { %v452_v34 = vpop.f32.mrf.mxu0 }
 0x12d   : > { %v453_v36 = vpop.f32.mrf.mxu0 }
 0x12e   : > { %v454_v37 = vadd.f32 %v453_v36, %v452_v34 }
 0x130   : > { %v306_v38 = vadd.f32 %v454_v37, %v238_v35 }
 0x132   : > { %309 = vst [vmem:[%s202_s22] sm:$0xff] %v306_v38 }
 0x133   : > { %581 = shalt.err (!%p578_p0)
}
 0x134   : > { %s582_s8 = scalar_lea.hbm %s322_s28, 128  ;;  %s586_s11 = scalar_lea.hbm %s826_s3, 512 }
 0x135   : > { %p583_p5 = scmp.ne.s32.totalorder %s322_s28, %s582_s8  ;;  %p587_p1 = scmp.lt.s32.totalorder %s322_s28, %s826_s3 }
 0x136   : > { %p588_p4 = scmp.lt.s32.totalorder %s586_s11, %s582_s8 }
 0x137   : > { %p584_p9 = pnand %p583_p5, %p842_p3 }
 0x138   : > { %p589_p6 = por %p588_p4, %p587_p1 }
 0x139   : > { %p585_p11 = pneg %p584_p9 }
 0x13b   : > { %p590_p8 = pnand %p589_p6, %p585_p11 }
 0x13d   : > { %593 = shalt.err (!%p590_p8)
}
 0x13e   : > { %461 = dma.vmem_to_hbm [thread:$0]  (%p842_p3), %s325_s23, 128, %s322_s28, %s311_s29  }
 0x13f PF: > { %p478_p10 = scmp.ge.s32.totalorder %s636_s17, 2  ;;  %s336_s26 = sand.u32 1, %s624_s14  }
 0x140   : > { %p843_p7 = scmp.ne.s32.totalorder %s832_s20, 0  ;;  %s337_s19 = scalar_lea.sflag [#allocation5], %s336_s26 }
 0x142   : > { %p472_p12 = pnand %p478_p10, %p843_p7 }
 0x144   : > { %p473_p2 = pneg %p472_p12 }
 0x146   : > { %619 = dma.done.wait (%p473_p2), %s337_s19, 128  }
 0x147   : > { %621 = vsyncadd (%p473_p2), %s337_s19, 4294967168  ;;  %p18_p13 = scmp.ge.s32.totalorder %s719_s25, 6   ;;  %s844_s14 = smov %s628_s15 }
 0x148   : > { %s845_s15 = smov %s632_s16  ;;  %s846_s16 = smov %s736_s6 }
 0x149   : > { %s847_s17 = smov %s719_s25  ;;  %20 = sbr.rel (!%p18_p13) target bundleno = 8 (0x8), region = 81 }
 0x14e   :  { %342 = vsyncpa [#allocation4], 1 }
 0x14f   :  { %344 = vsyncpa [#allocation4 + $0x1], 1 }
 0x150   :  { %345 = vsyncpa [#allocation7], 1 }
 0x151   :  { %346 = vsyncpa [#allocation5], 1 }
 0x152   :  { %348 = vsyncpa [#allocation5 + $0x1], 1 }

</bundles_post_ra>
